<compile_context>
chip_gen: v7x
topology: tpu7x:2x2x1
jax: 0.10.0
libtpu: 0.0.40
codegen_flags: <defaults>
</compile_context>

<pallas_src>
import functools

import jax
import jax.numpy as jnp
from jax.experimental import pallas as pl
from jax.experimental.pallas import tpu as pltpu


def _jsd_kernel(h1_ref, h2_ref, out_ref, *, n_rows: int, n_blocks: int,
                steps_per_part: int, masked: bool):
    p = pl.program_id(0)   # TensorCore / partition axis ("parallel")
    j = pl.program_id(1)   # reduction axis over row blocks ("arbitrary")
    tb, c = h1_ref.shape

    @pl.when(j == 0)
    def _():
        out_ref[...] = jnp.zeros_like(out_ref)

    x1 = h1_ref[...].astype(jnp.float32)
    x2 = h2_ref[...].astype(jnp.float32)

    # log-softmax / softmax pieces along the feature (lane) axis.
    z1 = x1 - jnp.max(x1, axis=1, keepdims=True)
    e1 = jnp.exp(z1)
    s1 = jnp.sum(e1, axis=1, keepdims=True)
    z2 = x2 - jnp.max(x2, axis=1, keepdims=True)
    e2 = jnp.exp(z2)
    s2 = jnp.sum(e2, axis=1, keepdims=True)

    # Narrow (tb, 1) reciprocals instead of full-width (tb, c) divisions.
    p1 = e1 * (1.0 / s1)
    p2 = e2 * (1.0 / s2)
    avg = 0.5 * (p1 + p2)
    log_avg = jnp.log(avg)

    # ls1 + ls2 == z1 + z2 - (log s1 + log s2): keep the correction as a
    # narrow column so ls1/ls2 are never materialized full width.
    col = jnp.log(s1) + jnp.log(s2)
    term = avg * (2.0 * log_avg - z1 - z2 + col)
    # xlogy convention (matches F.kl_div): zero target contributes zero.
    term = jnp.where(avg > 0.0, term, 0.0)

    if masked:  # static flag: ragged last block / padded rows / clamped step
        step = p * steps_per_part + j
        row = step * tb + jax.lax.broadcasted_iota(jnp.int32, (tb, 1), 0)
        valid = jnp.logical_and(row < n_rows, step < n_blocks)
        term = jnp.where(valid, term, 0.0)

    # Fold (tb, c) -> (8, c) with pure vreg adds; the single cross-lane reduce
    # and the batchmean scaling happen once in the wrapper on a tiny array.
    out_ref[...] += jnp.sum(term.reshape(tb // 8, 8, c), axis=0)[None, :, :]


def _vmem_capacity_bytes() -> int:
    try:
        cap = getattr(pltpu.get_tpu_info(), "vmem_capacity_bytes", None)
        if cap:
            return int(cap)
    except Exception:
        pass
    return 64 * 1024 * 1024  # conservative default (v7x per-TensorCore VMEM)


def _round_up(x: int, m: int) -> int:
    return ((x + m - 1) // m) * m


def _cdiv(a: int, b: int) -> int:
    return (a + b - 1) // b


def js_divergence(hidden1: jax.Array, hidden2: jax.Array) -> jax.Array:
    assert hidden1.shape == hidden2.shape and hidden1.ndim == 2
    n, c = hidden1.shape
    itemsize = jnp.dtype(hidden1.dtype).itemsize
    gran = 16 if itemsize == 2 else 8   # min sublane tile: (8,128) f32 / (16,128) bf16

    # Generation-aware scoped-VMEM limit: ~3/4 of capacity (≈96 MiB on 128 MiB
    # v5e/v6e parts, ≈48 MiB on v7x's 64 MiB per-TensorCore VMEM).
    vmem_cap = _vmem_capacity_bytes()
    vmem_limit = min((vmem_cap * 3) // 4, 96 * 1024 * 1024)

    # Row-tile budget: 2 inputs x 2 pipeline buffers of the raw dtype plus ~6
    # live f32 (tb, c) temporaries after the algebraic fusion (~40 B/elem f32).
    per_row_bytes = 4 * c * itemsize + 6 * c * 4
    if vmem_limit // per_row_bytes < gran:
        # TODO(synk): add feature-axis (lane) tiling with online-softmax
        # accumulation for very large c instead of failing.
        raise ValueError(f"feature dim {c} too large for single-pass row tiles")

    # Minimal pad only when the batch is not a multiple of the sublane granule;
    # ragged last row blocks are masked in-kernel (no tb-sized over-padding).
    n8 = _round_up(n, gran)
    if n8 != n:
        pad = n8 - n
        hidden1 = jnp.pad(hidden1, ((0, pad), (0, 0)))
        hidden2 = jnp.pad(hidden2, ((0, pad), (0, 0)))

    tb = (vmem_limit // per_row_bytes // gran) * gran
    tb = min(tb, 1024)                                       # diminishing returns
    tb = min(tb, max(gran, _round_up(_cdiv(n8, 2), gran)))   # >=2 blocks -> both v7x cores busy
    tb = max(min(tb, n8), gran)

    nb = _cdiv(n8, tb)                 # number of real row blocks
    num_parts = 2 if nb >= 2 else 1    # one partition per v7x TensorCore
    steps = _cdiv(nb, num_parts)
    masked = (num_parts * steps != nb) or (nb * tb != n)

    if num_parts * steps == nb:
        def row_idx(p, j):
            return (p * steps + j, 0)
    else:
        def row_idx(p, j):  # clamp the single overhang step; it is masked in-kernel
            return (jnp.minimum(p * steps + j, nb - 1), 0)

    block_bytes = tb * c * itemsize
    if nb > 2 and block_bytes < (1 << 20):
        # Small blocks (budget-floored tb at very large c): deepen the prefetch.
        row_spec = pl.BlockSpec((tb, c), row_idx, pipeline_mode=pl.Buffered(3))
    else:
        row_spec = pl.BlockSpec((tb, c), row_idx)

    out = pl.pallas_call(
        functools.partial(_jsd_kernel, n_rows=n, n_blocks=nb,
                          steps_per_part=steps, masked=masked),
        out_shape=jax.ShapeDtypeStruct((num_parts, 8, c), jnp.float32),
        grid_spec=pltpu.PrefetchScalarGridSpec(
            num_scalar_prefetch=0,
            grid=(num_parts, steps),
            in_specs=[row_spec, row_spec],
            out_specs=pl.BlockSpec((1, 8, c), lambda p, j: (p, 0, 0)),
        ),
        compiler_params=pltpu.CompilerParams(
            dimension_semantics=("parallel", "arbitrary"),
            vmem_limit_bytes=vmem_limit,
        ),
    )(hidden1, hidden2)

    # TODO(synk): for production shapes with c < 128, pack 128//c rows per vreg
    # (lane-dense layout) instead of padding lanes to 128.
    return jnp.sum(out) * (1.0 / (2.0 * n))


def _reference(hidden1, hidden2):
    ls1 = jax.nn.log_softmax(hidden1.astype(jnp.float32), axis=1)
    ls2 = jax.nn.log_softmax(hidden2.astype(jnp.float32), axis=1)
    p1, p2 = jnp.exp(ls1), jnp.exp(ls2)
    avg = 0.5 * (p1 + p2)
    nrows = hidden1.shape[0]
    kl1 = jnp.sum(avg * (jnp.log(avg) - ls1)) / nrows
    kl2 = jnp.sum(avg * (jnp.log(avg) - ls2)) / nrows
    return (kl1 + kl2) / 2.0


if __name__ == "__main__":
    key = jax.random.PRNGKey(0)
    k1, k2 = jax.random.split(key)
    batch, hidden = 8, 32
    h1 = jax.random.normal(k1, (batch, hidden), dtype=jnp.float32)
    h2 = jax.random.normal(k2, (batch, hidden), dtype=jnp.float32)

    jsd = js_divergence(h1, h2)
    jax.block_until_ready(jsd)
    ref = _reference(h1, h2)
    assert jnp.allclose(jsd, ref, rtol=1e-5, atol=1e-6), (jsd, ref)

    # Also exercise the masked-row path (batch not a multiple of 8).
    jsd_b = js_divergence(h1[:6], h2[:6])
    jax.block_until_ready(jsd_b)
    ref_b = _reference(h1[:6], h2[:6])
    assert jnp.allclose(jsd_b, ref_b, rtol=1e-5, atol=1e-6), (jsd_b, ref_b)

    print("KERNEL_OK")
</pallas_src>

<mosaic_0001>
module attributes {stable_mosaic.version = 11 : i64} {
  func.func @_jsd_kernel(%arg0: i32, %arg1: i32, %arg2: memref<8x32xf32, #tpu.memory_space<vmem>>, %arg3: memref<8x32xf32, #tpu.memory_space<vmem>>, %arg4: memref<1x8x32xf32, #tpu.memory_space<vmem>>) attributes {dimension_semantics = [#tpu.dimension_semantics<parallel>, #tpu.dimension_semantics<arbitrary>], iteration_bounds = array<i64: 1, 1>, scalar_prefetch = 0 : i64, scratch_operands = 0 : i64, tpu.core_type = #tpu.core_type<tc>, window_params = [{transform_indices = @transform_0, window_bounds = array<i64: 8, 32>}, {transform_indices = @transform_1, window_bounds = array<i64: 8, 32>}, {transform_indices = @transform_2, window_bounds = array<i64: 1, 8, 32>}]} {
    %c0_i32 = arith.constant 0 : i32
    %0 = arith.cmpi eq, %arg1, %c0_i32 : i32
    %1 = arith.extui %0 : i1 to i32
    %c0_i32_0 = arith.constant 0 : i32
    %2 = arith.cmpi ne, %1, %c0_i32_0 : i32
    scf.if %2 {
      %cst_20 = arith.constant 0.000000e+00 : f32
      %51 = vector.broadcast %cst_20 : f32 to vector<1x8x32xf32>
      %c0_21 = arith.constant 0 : index
      %c0_22 = arith.constant 0 : index
      %c0_23 = arith.constant 0 : index
      %52 = vector.load %arg4[%c0_21, %c0_22, %c0_23] : memref<1x8x32xf32, #tpu.memory_space<vmem>>, vector<1x8x32xf32>
      tpu.vector_store %arg4[%c0_21, %c0_22, %c0_23], %51 {strides = array<i32>} : memref<1x8x32xf32, #tpu.memory_space<vmem>>, vector<1x8x32xf32>,
    } else {
    }
    %c0 = arith.constant 0 : index
    %c0_1 = arith.constant 0 : index
    %3 = vector.load %arg2[%c0, %c0_1] : memref<8x32xf32, #tpu.memory_space<vmem>>, vector<8x32xf32>
    %c0_2 = arith.constant 0 : index
    %c0_3 = arith.constant 0 : index
    %4 = vector.load %arg3[%c0_2, %c0_3] : memref<8x32xf32, #tpu.memory_space<vmem>>, vector<8x32xf32>
    %cst = arith.constant dense<0xFF800000> : vector<8xf32>
    %5 = vector.multi_reduction <maximumf>, %3, %cst [1] : vector<8x32xf32> to vector<8xf32>
    %6 = vector.shape_cast %5 : vector<8xf32> to vector<8x1xf32>
    %7 = vector.broadcast %6 : vector<8x1xf32> to vector<8x32xf32>
    %8 = arith.subf %3, %7 : vector<8x32xf32>
    %9 = math.exp %8 : vector<8x32xf32>
    %cst_4 = arith.constant dense<0.000000e+00> : vector<8xf32>
    %10 = vector.multi_reduction <add>, %9, %cst_4 [1] : vector<8x32xf32> to vector<8xf32>
    %11 = vector.shape_cast %10 : vector<8xf32> to vector<8x1xf32>
    %cst_5 = arith.constant dense<0xFF800000> : vector<8xf32>
    %12 = vector.multi_reduction <maximumf>, %4, %cst_5 [1] : vector<8x32xf32> to vector<8xf32>
    %13 = vector.shape_cast %12 : vector<8xf32> to vector<8x1xf32>
    %14 = vector.broadcast %13 : vector<8x1xf32> to vector<8x32xf32>
    %15 = arith.subf %4, %14 : vector<8x32xf32>
    %16 = math.exp %15 : vector<8x32xf32>
    %cst_6 = arith.constant dense<0.000000e+00> : vector<8xf32>
    %17 = vector.multi_reduction <add>, %16, %cst_6 [1] : vector<8x32xf32> to vector<8xf32>
    %18 = vector.shape_cast %17 : vector<8xf32> to vector<8x1xf32>
    %cst_7 = arith.constant 1.000000e+00 : f32
    %19 = vector.broadcast %cst_7 : f32 to vector<8x1xf32>
    %20 = arith.divf %19, %11 : vector<8x1xf32>
    %21 = vector.broadcast %20 : vector<8x1xf32> to vector<8x32xf32>
    %22 = arith.mulf %9, %21 : vector<8x32xf32>
    %cst_8 = arith.constant 1.000000e+00 : f32
    %23 = vector.broadcast %cst_8 : f32 to vector<8x1xf32>
    %24 = arith.divf %23, %18 : vector<8x1xf32>
    %25 = vector.broadcast %24 : vector<8x1xf32> to vector<8x32xf32>
    %26 = arith.mulf %16, %25 : vector<8x32xf32>
    %27 = arith.addf %22, %26 : vector<8x32xf32>
    %cst_9 = arith.constant 5.000000e-01 : f32
    %28 = vector.broadcast %cst_9 : f32 to vector<8x32xf32>
    %29 = arith.mulf %28, %27 : vector<8x32xf32>
    %30 = math.log %29 : vector<8x32xf32>
    %31 = math.log %11 : vector<8x1xf32>
    %32 = math.log %18 : vector<8x1xf32>
    %33 = arith.addf %31, %32 : vector<8x1xf32>
    %cst_10 = arith.constant 2.000000e+00 : f32
    %34 = vector.broadcast %cst_10 : f32 to vector<8x32xf32>
    %35 = arith.mulf %34, %30 : vector<8x32xf32>
    %36 = arith.subf %35, %8 : vector<8x32xf32>
    %37 = arith.subf %36, %15 : vector<8x32xf32>
    %38 = vector.broadcast %33 : vector<8x1xf32> to vector<8x32xf32>
    %39 = arith.addf %37, %38 : vector<8x32xf32>
    %40 = arith.mulf %29, %39 : vector<8x32xf32>
    %cst_11 = arith.constant 0.000000e+00 : f32
    %41 = vector.broadcast %cst_11 : f32 to vector<8x32xf32>
    %42 = arith.cmpf ogt, %29, %41 : vector<8x32xf32>
    %cst_12 = arith.constant 0.000000e+00 : f32
    %43 = vector.broadcast %cst_12 : f32 to vector<8x32xf32>
    %44 = arith.select %42, %40, %43 : vector<8x32xi1>, vector<8x32xf32>
    %c0_13 = arith.constant 0 : index
    %c0_14 = arith.constant 0 : index
    %c0_15 = arith.constant 0 : index
    %45 = vector.load %arg4[%c0_13, %c0_14, %c0_15] : memref<1x8x32xf32, #tpu.memory_space<vmem>>, vector<1x8x32xf32>
    %46 = vector.shape_cast %44 : vector<8x32xf32> to vector<1x8x32xf32>
    %cst_16 = arith.constant dense<0.000000e+00> : vector<8x32xf32>
    %47 = vector.multi_reduction <add>, %46, %cst_16 [0] : vector<1x8x32xf32> to vector<8x32xf32>
    %48 = vector.shape_cast %47 : vector<8x32xf32> to vector<1x8x32xf32>
    %49 = arith.addf %45, %48 : vector<1x8x32xf32>
    %c0_17 = arith.constant 0 : index
    %c0_18 = arith.constant 0 : index
    %c0_19 = arith.constant 0 : index
    %50 = vector.load %arg4[%c0_17, %c0_18, %c0_19] : memref<1x8x32xf32, #tpu.memory_space<vmem>>, vector<1x8x32xf32>
    tpu.vector_store %arg4[%c0_17, %c0_18, %c0_19], %49 {strides = array<i32>} : memref<1x8x32xf32, #tpu.memory_space<vmem>>, vector<1x8x32xf32>,
    return
  }
  func.func @transform_0(%arg0: i32, %arg1: i32) -> (i32, i32) {
    %c1_i32 = arith.constant 1 : i32
    %0 = arith.muli %arg0, %c1_i32 : i32
    %1 = arith.addi %0, %arg1 : i32
    %c0_i32 = arith.constant 0 : i32
    %c0_i32_0 = arith.constant 0 : i32
    return %1, %c0_i32 : i32, i32
  }
  func.func @transform_1(%arg0: i32, %arg1: i32) -> (i32, i32) {
    %c1_i32 = arith.constant 1 : i32
    %0 = arith.muli %arg0, %c1_i32 : i32
    %1 = arith.addi %0, %arg1 : i32
    %c0_i32 = arith.constant 0 : i32
    %c0_i32_0 = arith.constant 0 : i32
    return %1, %c0_i32 : i32, i32
  }
  func.func @transform_2(%arg0: i32, %arg1: i32) -> (i32, i32, i32) {
    %c0_i32 = arith.constant 0 : i32
    %c0_i32_0 = arith.constant 0 : i32
    %c0_i32_1 = arith.constant 0 : i32
    return %arg0, %c0_i32, %c0_i32_0 : i32, i32, i32
  }
}

</mosaic_0001>

<bundles_post_ra>
// kernel: tpu_custom_call.1
= control target key start
LH: loop header
LB: loop body
LE: loop exit
PB: predicated region body
PF: predicated region fallthrough
CT: control target
= control target key end

     0   :  { %7 = vsyncpa [#allocation3], 0  ;;  %s264_s0 = inlined_call_operand.hbm [shape: f32[8,32], index: 0, kind: input, shape index: {}]   ;;  %s265_s1 = inlined_call_operand.hbm [shape: f32[8,32], index: 1, kind: input, shape index: {}]   ;;  %s266_s2 = inlined_call_operand.hbm [shape: f32[1,8,32], index: 2, kind: output, shape index: {}]  }
   0x1   :  { %8 = vsyncpa [#allocation6], 0 }
   0x2   :  { %9 = vsyncpa [#allocation4], 0  ;;  %s203_s9 = smov [#allocation2]   ;;  %s204_s11 = smov [#allocation5]  }
   0x3   :  { %s19_s10 = sshll.u32 %s203_s9, 4  ;;  %s32_s12 = sshll.u32 %s204_s11, 4  ;;  %s20_s10 = int_to_ptr.vmem [resolvable:$true] %s19_s10  ;;  %s33_s12 = int_to_ptr.vmem [resolvable:$true] %s32_s12 }
   0x4   :  { %s131_s15 = scalar_lea.hbm %s264_s0, 128 }
   0x5   :  { %p132_p0 = scmp.ne.s32.totalorder %s264_s0, %s131_s15  ;;  %p135_p1 = scmp.lt.u32.totalorder %s131_s15, %s264_s0 }
   0x7   :  { %p137_p2 = pnand %p135_p1, %p132_p0 }
   0x9   :  { %140 = shalt.err (!%p137_p2)
}
   0xa   :  { %s141_s20 = scalar_lea.vmem %s20_s10, 128  ;;  %p146_p4 = scmp.lt.s32.totalorder %s20_s10, %s20_s10 }
   0xb   :  { %p142_p3 = scmp.ne.s32.totalorder %s20_s10, %s141_s20  ;;  %p147_p5 = scmp.lt.s32.totalorder %s141_s20, %s141_s20 }
   0xd   :  { %p148_p6 = por %p147_p5, %p146_p4 }
   0xf   :  { %p149_p7 = pnand %p148_p6, %p142_p3 }
  0x11   :  { %152 = shalt.err (!%p149_p7)
}
  0x12   :  { %22 = dma.hbm_to_vmem [thread:$0]  %s264_s0, 128, %s20_s10, [#allocation3]  }
  0x13   :  { %s153_s25 = scalar_lea.hbm %s265_s1, 128 }
  0x14   :  { %p154_p8 = scmp.ne.s32.totalorder %s265_s1, %s153_s25  ;;  %p157_p9 = scmp.lt.u32.totalorder %s153_s25, %s265_s1 }
  0x16   :  { %p159_p10 = pnand %p157_p9, %p154_p8 }
  0x18   :  { %162 = shalt.err (!%p159_p10)
}
  0x19   :  { %s163_s30 = scalar_lea.vmem %s33_s12, 128  ;;  %p168_p12 = scmp.lt.s32.totalorder %s33_s12, %s33_s12 }
  0x1a   :  { %p164_p11 = scmp.ne.s32.totalorder %s33_s12, %s163_s30  ;;  %p169_p13 = scmp.lt.s32.totalorder %s163_s30, %s163_s30 }
  0x1c   :  { %p170_p0 = por %p169_p13, %p168_p12 }
  0x1e   :  { %p171_p1 = pnand %p170_p0, %p164_p11 }
  0x20   :  { %174 = shalt.err (!%p171_p1)
}
  0x21   :  { %35 = dma.hbm_to_vmem [thread:$0]  %s265_s1, 128, %s33_s12, [#allocation6]  }
  0x22   :  { %197 = dma.done.wait [#allocation3], 128  }
  0x23   :  { %198 = vsyncadd [#allocation3], 4294967168 }
  0x24   :  { %199 = dma.done.wait [#allocation6], 128  }
  0x25   :  { %200 = vsyncadd [#allocation6], 4294967168  ;;  %vm48_vm0 = vcmask 261120   ;;  %v50_v0 = vld [vmem:[#allocation2] sm:$0xff]  ;;  %v51_v1 = vld [vmem:[#allocation5] sm:$0xff]  ;;  %v205_v14 = vmov 0.0  }
  0x26   :  { %v53_v2 = vsel %vm48_vm0, %v50_v0, -inf  ;;  %v62_v3 = vsel %vm48_vm0, %v51_v1, -inf  ;;  %49 = vst.msk [vmem:[#allocation7] sm:$0xff] %vm48_vm0, %v205_v14  ;;  %s206_s1 = smov [#allocation7]  }
  0x27   :  { %54 = vmax.xlane.f32.xlu0 %v53_v2  ;;  %s103_s4 = sshll.u32 %s206_s1, 4  ;;  %s104_s4 = int_to_ptr.vmem [resolvable:$true] %s103_s4 }
  0x28   :  { %s175_s5 = scalar_lea.vmem %s104_s4, 128  ;;  %p180_p3 = scmp.lt.s32.totalorder %s104_s4, %s104_s4 }
  0x29   :  { %p176_p2 = scmp.ne.s32.totalorder %s104_s4, %s175_s5  ;;  %p181_p4 = scmp.lt.s32.totalorder %s175_s5, %s175_s5 }
  0x2b   :  { %63 = vmax.xlane.f32.xlu0 %v62_v3  ;;  %p182_p5 = por %p181_p4, %p180_p3 }
  0x2d   :  { %v93_v35 = vld [vmem:[#allocation7] sm:$0xff]  ;;  %p183_p6 = pnand %p182_p5, %p176_p2 }
  0xb4   :  { %v55_v4 = vpop.xlane.xlu0 %54 }
  0xb5   :  { %v56_v5 = vsub.f32 %v50_v0, %v55_v4 }
  0xb7   :  { %v57_v6 = vmul.f32 1.442695, %v56_v5 }
  0xb8   :  { %v64_v7 = vpop.xlane.xlu0 %63 }
  0xb9   :  { %117 = vpow2.f32 %v57_v6  ;;  %v65_v8 = vsub.f32 %v51_v1, %v64_v7 }
  0xbb   :  { %v66_v9 = vmul.f32 1.442695, %v65_v8 }
  0xbd   :  { %119 = vpow2.f32 %v66_v9 }
  0xc3   :  { %v118_v10 = vpop.eup %117 }
  0xc4   :  { %v59_v11 = vsel %vm48_vm0, %v118_v10, 0.0 }
  0xc5   :  { %60 = vadd.xlane.f32.xlu1 %v59_v11 }
  0xc7   :  { %v120_v12 = vpop.eup %119 }
  0xc8   :  { %v68_v13 = vsel %vm48_vm0, %v120_v12, 0.0 }
  0xc9   :  { %69 = vadd.xlane.f32.xlu1 %v68_v13 }
 0x152   :  { %v61_v15 = vpop.xlane.xlu1 %60 }
 0x153   :  { %121 = vrcp.f32 %v61_v15 }
 0x156   :  { %v70_v16 = vpop.xlane.xlu1 %69 }
 0x157   :  { %123 = vrcp.f32 %v70_v16 }
 0x158   :  { %125 = vlog2.f32 %v70_v16 }
 0x15d   :  { %v122_v17 = vpop.eup %121 }
 0x15e   :  { %v73_v19 = vmul.f32 %v122_v17, %v118_v10 }
 0x161   :  { %v124_v18 = vpop.eup %123 }
 0x162   :  { %v76_v20 = vmul.f32 %v124_v18, %v120_v12  ;;  %v126_v23 = vpop.eup %125 }
 0x163   :  { %v84_v27 = vmul.f32 0.6931472, %v126_v23 }
 0x164   :  { %v77_v21 = vadd.f32 %v76_v20, %v73_v19 }
 0x166   :  { %v78_v22 = vmul.f32 0.5, %v77_v21 }
 0x168   :  { %127 = vlog2.f32 %v78_v22  ;;  %vm91_vm1 = vcmp.gt.f32.partialorder %v78_v22, 0.0 }
 0x169   :  { %129 = vlog2.f32 %v61_v15 }
 0x172   :  { %v128_v24 = vpop.eup %127 }
 0x173   :  { %v80_v25 = vmul.f32 0.6931472, %v128_v24  ;;  %v130_v26 = vpop.eup %129 }
 0x174   :  { %v82_v29 = vmul.f32 0.6931472, %v130_v26 }
 0x175   :  { %v86_v28 = vmul.f32 2.0, %v80_v25 }
 0x176   :  { %v85_v31 = vadd.f32 %v84_v27, %v82_v29 }
 0x177   :  { %v87_v30 = vsub.f32 %v86_v28, %v56_v5 }
 0x179   :  { %v88_v32 = vsub.f32 %v87_v30, %v65_v8 }
 0x17b   :  { %v89_v33 = vadd.f32 %v88_v32, %v85_v31 }
 0x17d   :  { %v90_v34 = vmul.f32 %v89_v33, %v78_v22 }
 0x17f   :  { %v92_v36 = vsel %vm91_vm1, %v90_v34, 0.0 }
 0x180   :  { %v95_v37 = vadd.f32 %v93_v35, %v92_v36 }
 0x182   :  { %96 = vst.msk [vmem:[#allocation7] sm:$0xff] %vm48_vm0, %v95_v37 }
 0x183   :  { %186 = shalt.err (!%p183_p6)
}
 0x184   :  { %s187_s8 = scalar_lea.hbm %s266_s2, 128 }
 0x185   :  { %p188_p7 = scmp.ne.s32.totalorder %s266_s2, %s187_s8  ;;  %p191_p8 = scmp.lt.u32.totalorder %s187_s8, %s266_s2 }
 0x187   :  { %p193_p9 = pnand %p191_p8, %p188_p7 }
 0x189   :  { %196 = shalt.err (!%p193_p9)
}
 0x18a   :  { %106 = dma.vmem_to_hbm [thread:$0]  %s104_s4, 128, %s266_s2, [#allocation4]  }
 0x18b   :  { %201 = dma.done.wait [#allocation4], 128  }
 0x18c   :  { %202 = vsyncadd [#allocation4], 4294967168 }
 0x18d   :  { %110 = vsyncpa [#allocation3], 1 }
 0x18e   :  { %111 = vsyncpa [#allocation6], 1 }
 0x18f   :  { %112 = vsyncpa [#allocation4], 1 }

</bundles_post_ra>
